<compile_context>
chip_gen: v5e
topology: v5e:2x2
jax: 0.10.0
libtpu: 0.0.40
codegen_flags: <defaults>
</compile_context>

<pallas_src>
import math
from functools import partial

import jax
import jax.numpy as jnp
from jax.experimental import pallas as pl
from jax.experimental.pallas import tpu as pltpu


# ---------------------------------------------------------------------------
# Pass 1: fused (pre-scaled) Q / K / V projection over flattened rows.
# ---------------------------------------------------------------------------
def _qkv_proj_kernel(x_ref, wqkv_ref, bqkv_ref, q_ref, kv_ref, *, hdt):
    # (tm, dim) @ (dim, 3*hdt) on the MXU; f32 accumulation, bias added in f32.
    qkv = (jnp.dot(x_ref[...], wqkv_ref[...], preferred_element_type=jnp.float32)
           + bqkv_ref[...])
    q_ref[...] = qkv[:, :hdt].astype(q_ref.dtype)      # q already carries 1/sqrt(hd)
    kv_ref[...] = qkv[:, hdt:].astype(kv_ref.dtype)    # [k | v]


# ---------------------------------------------------------------------------
# Pass 2: flash-style attention (online softmax over KV blocks) + output proj.
# ---------------------------------------------------------------------------
def _flash_attn_kernel(q_ref, kv_ref, kb_ref, wf_ref, bf_ref, o_ref,
                       m_ref, l_ref, acc_ref, *, num_head, head_dim):
    hdt = num_head * head_dim
    kvi = pl.program_id(2)

    @pl.when(kvi == 0)
    def _init():
        m_ref[...] = jnp.full_like(m_ref, -1e30)
        l_ref[...] = jnp.zeros_like(l_ref)
        acc_ref[...] = jnp.zeros_like(acc_ref)

    kb = kb_ref[...]                                   # (1, tk) f32 additive mask bias

    # Static (small) head loop; per-head slices are loaded from VMEM refs so only
    # one head's operands are live at a time (keeps vreg/VMEM pressure low).
    for h in range(num_head):
        cols = slice(h * head_dim, (h + 1) * head_dim)
        qh = q_ref[:, cols]                                            # (tq, hd) bf16
        kh = kv_ref[:, cols]                                           # (tk, hd) bf16
        vh = kv_ref[:, hdt + h * head_dim: hdt + (h + 1) * head_dim]   # (tk, hd) bf16

        # Scores: contraction over the shared head_dim axis (no materialized K^T);
        # scale is already folded into q, so this is a pure matmul + mask add.
        s = jnp.einsum('qd,kd->qk', qh, kh,
                       preferred_element_type=jnp.float32) + kb        # (tq, tk) f32

        m_old = m_ref[:, h:h + 1]
        m_new = jnp.maximum(m_old, jnp.max(s, axis=-1, keepdims=True))
        alpha = jnp.exp(m_old - m_new)
        p = jnp.exp(s - m_new)
        l_ref[:, h:h + 1] = alpha * l_ref[:, h:h + 1] + jnp.sum(p, axis=-1,
                                                                keepdims=True)
        acc_ref[:, cols] = alpha * acc_ref[:, cols] + jnp.dot(
            p.astype(jnp.bfloat16), vh, preferred_element_type=jnp.float32)
        m_ref[:, h:h + 1] = m_new

    @pl.when(kvi == pl.num_programs(2) - 1)
    def _finalize():
        inv_l = pl.reciprocal(l_ref[...], approx=True)                 # (tq, num_head)
        # Normalize each head in registers and combine; single well-shaped
        # (tq, hdt) x (hdt, dim) output projection (K = hdt, not head_dim).
        heads = [
            (acc_ref[:, h * head_dim:(h + 1) * head_dim] * inv_l[:, h:h + 1]
             ).astype(jnp.bfloat16)
            for h in range(num_head)
        ]
        attn = jnp.concatenate(heads, axis=-1)                         # (tq, hdt) bf16
        out = (jnp.dot(attn, wf_ref[...], preferred_element_type=jnp.float32)
               + bf_ref[...])
        o_ref[...] = out.astype(o_ref.dtype)


# ---------------------------------------------------------------------------
# Tile selection helpers.
# ---------------------------------------------------------------------------
def _pick_seq_tile(S):
    """Sequence tile: multiple of 128 (lane-dense key-bias block) or full S."""
    for t in (512, 256, 128):
        if t <= S and S % t == 0:
            return t
    return S


def _pick_row_tile(n):
    """Row tile for the projection pass; prefer >=2 grid steps (v7x megacore)."""
    cands = [t for t in (1024, 512, 256, 128, 64, 32, 16, 8) if t <= n and n % t == 0]
    if not cands:
        return n
    multi = [t for t in cands if n // t >= 2]
    return multi[0] if multi else cands[0]


# ---------------------------------------------------------------------------
# Wrapper.
# ---------------------------------------------------------------------------
def attention_pallas(x, mask, params, *, num_head, head_dim, input_shape=None,
                     out_dtype=jnp.bfloat16):
    """Forward pass of the MRA2 Attention module (exact dense attention)."""
    B, S, dim = x.shape
    hdt = num_head * head_dim

    if input_shape is not None:
        H, W = input_shape
        assert H * W == S and H % 4 == 0 and W % 8 == 0
        x = x.reshape(B, H // 4, 4, W // 8, 8, dim)
        x = jnp.transpose(x, (0, 1, 3, 2, 4, 5)).reshape(B, S, dim)
        mask = mask.reshape(B, H // 4, 4, W // 8, 8)
        mask = jnp.transpose(mask, (0, 1, 3, 2, 4)).reshape(B, S)

    # Wrapper-side operand prep (tiny weight-sized ops, done once per call):
    #  - softmax scale folded into W_q / b_q (exact for power-of-2 head_dim)
    #  - Q/K/V weights fused and pre-transposed to (in, out); bf16 MXU operands
    scale = 1.0 / math.sqrt(head_dim)
    wqkv = jnp.concatenate([params["wq"] * scale, params["wk"], params["wv"]],
                           axis=0).T.astype(jnp.bfloat16)           # (dim, 3*hdt)
    bqkv = jnp.concatenate([params["bq"] * scale, params["bk"], params["bv"]]
                           ).reshape(1, 3 * hdt).astype(jnp.float32)
    wf_t = params["wf"].T.astype(jnp.bfloat16)                      # (hdt, dim)
    bf = params["bf"].reshape(1, dim).astype(jnp.float32)
    key_bias = ((1.0 - mask.astype(jnp.float32)) * (-1e9)).reshape(B, 1, S)
    x_bf = x.astype(jnp.bfloat16)

    # ---- Pass 1: fused QKV projection over flattened (batch*seq) rows ----
    rows = B * S
    tm = _pick_row_tile(rows)
    proj_cost = pl.CostEstimate(
        flops=2 * rows * dim * 3 * hdt,
        transcendentals=0,
        bytes_accessed=rows * dim * 2 + dim * 3 * hdt * 2 + rows * 3 * hdt * 2)
    q2d, kv2d = pl.pallas_call(
        partial(_qkv_proj_kernel, hdt=hdt),
        out_shape=(jax.ShapeDtypeStruct((rows, hdt), jnp.bfloat16),
                   jax.ShapeDtypeStruct((rows, 2 * hdt), jnp.bfloat16)),
        grid_spec=pltpu.PrefetchScalarGridSpec(
            num_scalar_prefetch=0,
            grid=(rows // tm,),
            in_specs=[
                pl.BlockSpec((tm, dim), lambda i: (i, 0)),
                pl.BlockSpec((dim, 3 * hdt), lambda i: (0, 0)),
                pl.BlockSpec((1, 3 * hdt), lambda i: (0, 0)),
            ],
            out_specs=[
                pl.BlockSpec((tm, hdt), lambda i: (i, 0)),
                pl.BlockSpec((tm, 2 * hdt), lambda i: (i, 0)),
            ]),
        compiler_params=pltpu.CompilerParams(
            dimension_semantics=("parallel",),
            vmem_limit_bytes=64 * 1024 * 1024),
        cost_estimate=proj_cost,
    )(x_bf.reshape(rows, dim), wqkv, bqkv)
    q = q2d.reshape(B, S, hdt)
    kv = kv2d.reshape(B, S, 2 * hdt)

    # ---- Pass 2: flash attention + output projection ----
    tq = _pick_seq_tile(S)
    tk = _pick_seq_tile(S)
    n_q, n_kv = S // tq, S // tk
    attn_cost = pl.CostEstimate(
        flops=B * (4 * S * S * hdt + 2 * S * hdt * dim),
        transcendentals=B * num_head * S * S,
        bytes_accessed=(B * S * hdt * 2 + B * n_q * S * 2 * hdt * 2
                        + B * n_q * S * 4 + hdt * dim * 2
                        + B * S * dim * jnp.dtype(out_dtype).itemsize))
    out = pl.pallas_call(
        partial(_flash_attn_kernel, num_head=num_head, head_dim=head_dim),
        out_shape=jax.ShapeDtypeStruct((B, S, dim), out_dtype),
        grid_spec=pltpu.PrefetchScalarGridSpec(
            num_scalar_prefetch=0,
            grid=(B, n_q, n_kv),                     # kv (reduction) axis last
            in_specs=[
                pl.BlockSpec((None, tq, hdt), lambda b, qi, ki: (b, qi, 0)),     # q
                pl.BlockSpec((None, tk, 2 * hdt), lambda b, qi, ki: (b, ki, 0)), # kv
                pl.BlockSpec((None, 1, tk), lambda b, qi, ki: (b, 0, ki)),       # bias
                pl.BlockSpec((hdt, dim), lambda b, qi, ki: (0, 0)),              # W_ff
                pl.BlockSpec((1, dim), lambda b, qi, ki: (0, 0)),                # b_ff
            ],
            out_specs=pl.BlockSpec((None, tq, dim), lambda b, qi, ki: (b, qi, 0)),
            scratch_shapes=[
                pltpu.VMEM((tq, num_head), jnp.float32),   # running max (per head)
                pltpu.VMEM((tq, num_head), jnp.float32),   # running denom (per head)
                pltpu.VMEM((tq, hdt), jnp.float32),        # running PV accumulator
            ]),
        compiler_params=pltpu.CompilerParams(
            dimension_semantics=("parallel", "parallel", "arbitrary"),
            vmem_limit_bytes=64 * 1024 * 1024),
        cost_estimate=attn_cost,
    )(q, kv, key_bias, wf_t, bf)

    if input_shape is not None:
        H, W = input_shape
        out = out.reshape(B, H // 4, W // 8, 4, 8, dim)
        out = jnp.transpose(out, (0, 1, 3, 2, 4, 5)).reshape(B, S, dim)
    return out


# ---------------------------------------------------------------------------
# Pure-JAX f32 reference of the same (exact dense) forward pass.
# ---------------------------------------------------------------------------
def attention_reference(x, mask, params, *, num_head, head_dim, input_shape=None):
    B, S, dim = x.shape
    hdt = num_head * head_dim
    if input_shape is not None:
        H, W = input_shape
        x = jnp.transpose(x.reshape(B, H // 4, 4, W // 8, 8, dim),
                          (0, 1, 3, 2, 4, 5)).reshape(B, S, dim)
        mask = jnp.transpose(mask.reshape(B, H // 4, 4, W // 8, 8),
                             (0, 1, 3, 2, 4)).reshape(B, S)
    q = x @ params["wq"].T + params["bq"]
    k = x @ params["wk"].T + params["bk"]
    v = x @ params["wv"].T + params["bv"]
    split = lambda t: jnp.transpose(t.reshape(B, S, num_head, head_dim), (0, 2, 1, 3))
    q, k, v = split(q), split(k), split(v)
    s = jnp.einsum('bhqd,bhkd->bhqk', q, k) / math.sqrt(head_dim)
    s = s + (1.0 - mask[:, None, None, :]) * (-1e9)
    p = jax.nn.softmax(s, axis=-1)
    o = jnp.einsum('bhqk,bhkd->bhqd', p, v)
    o = jnp.transpose(o, (0, 2, 1, 3)).reshape(B, S, hdt)
    out = o @ params["wf"].T + params["bf"]
    if input_shape is not None:
        H, W = input_shape
        out = jnp.transpose(out.reshape(B, H // 4, W // 8, 4, 8, dim),
                            (0, 1, 3, 2, 4, 5)).reshape(B, S, dim)
    return out


def init_params(key, dim, num_head, head_dim):
    """Deterministic PyTorch-Linear-style init: U(-1/sqrt(fan_in), 1/sqrt(fan_in))."""
    hdt = num_head * head_dim
    keys = jax.random.split(key, 8)

    def lin(kw, kb, out_f, in_f):
        bound = 1.0 / math.sqrt(in_f)
        w = jax.random.uniform(kw, (out_f, in_f), jnp.float32, -bound, bound)
        b = jax.random.uniform(kb, (out_f,), jnp.float32, -bound, bound)
        return w, b

    wq, bq = lin(keys[0], keys[1], hdt, dim)
    wk, bk = lin(keys[2], keys[3], hdt, dim)
    wv, bv = lin(keys[4], keys[5], hdt, dim)
    wf, bf = lin(keys[6], keys[7], dim, hdt)
    return dict(wq=wq, bq=bq, wk=wk, bk=bk, wv=wv, bv=bv, wf=wf, bf=bf)


if __name__ == "__main__":
    # Small config consistent with the module: max_seq_len must be a multiple of 32.
    config = dict(dim=32, head_dim=16, num_head=2, num_block=4, approx_mode="full",
                  max_seq_len=32, input_shape=(4, 8))
    B, S, dim = 2, config["max_seq_len"], config["dim"]

    key = jax.random.PRNGKey(0)
    k_param, k_x = jax.random.split(key)
    params = init_params(k_param, dim, config["num_head"], config["head_dim"])

    x = jax.random.normal(k_x, (B, S, dim), jnp.float32)
    # Mask: last 4 tokens of batch 1 are padding.
    mask = jnp.ones((B, S), jnp.float32).at[1, -4:].set(0.0)

    out = attention_pallas(x, mask, params,
                           num_head=config["num_head"],
                           head_dim=config["head_dim"],
                           input_shape=config["input_shape"])
    out = jax.block_until_ready(out)
    assert out.shape == (B, S, dim), out.shape
    assert bool(jnp.all(jnp.isfinite(out)))

    # Loose tolerance: bf16 MXU operands + bf16 output, f32 accumulation,
    # approx-reciprocal softmax denominator.
    ref = attention_reference(x, mask, params,
                              num_head=config["num_head"],
                              head_dim=config["head_dim"],
                              input_shape=config["input_shape"])
    err = float(jnp.max(jnp.abs(out.astype(jnp.float32) - ref)))
    assert err < 0.15, err
    print("KERNEL_OK")
</pallas_src>

<mosaic_0001>
module attributes {stable_mosaic.version = 11 : i64} {
  func.func @_qkv_proj_kernel(%arg0: i32, %arg1: memref<32x32xbf16, #tpu.memory_space<vmem>>, %arg2: memref<32x96xbf16, #tpu.memory_space<vmem>>, %arg3: memref<1x96xf32, #tpu.memory_space<vmem>>, %arg4: memref<32x32xbf16, #tpu.memory_space<vmem>>, %arg5: memref<32x64xbf16, #tpu.memory_space<vmem>>) attributes {dimension_semantics = [#tpu.dimension_semantics<parallel>], iteration_bounds = array<i64: 2>, scalar_prefetch = 0 : i64, scratch_operands = 0 : i64, tpu.core_type = #tpu.core_type<tc>, window_params = [{transform_indices = @transform_0, window_bounds = array<i64: 32, 32>}, {pipeline_mode = #tpu.pipeline_mode<synchronous>, transform_indices = @transform_1, window_bounds = array<i64: 32, 96>}, {pipeline_mode = #tpu.pipeline_mode<synchronous>, transform_indices = @transform_2, window_bounds = array<i64: 1, 96>}, {transform_indices = @transform_3, window_bounds = array<i64: 32, 32>}, {transform_indices = @transform_4, window_bounds = array<i64: 32, 64>}]} {
    %c0 = arith.constant 0 : index
    %c0_0 = arith.constant 0 : index
    %0 = vector.load %arg1[%c0, %c0_0] : memref<32x32xbf16, #tpu.memory_space<vmem>>, vector<32x32xbf16>
    %c0_1 = arith.constant 0 : index
    %c0_2 = arith.constant 0 : index
    %1 = vector.load %arg2[%c0_1, %c0_2] : memref<32x96xbf16, #tpu.memory_space<vmem>>, vector<32x96xbf16>
    %cst = arith.constant dense<0.000000e+00> : vector<32x96xf32>
    %2 = tpu.matmul %0, %1, %cst {dimension_numbers = #tpu.dot_dimension_numbers<[1], [0], [0], [1], [0, 0, 1, 1], [], []>} : vector<32x32xbf16>, vector<32x96xbf16>, vector<32x96xf32> -> vector<32x96xf32>
    %c0_3 = arith.constant 0 : index
    %c0_4 = arith.constant 0 : index
    %3 = vector.load %arg3[%c0_3, %c0_4] : memref<1x96xf32, #tpu.memory_space<vmem>>, vector<1x96xf32>
    %4 = vector.broadcast %3 : vector<1x96xf32> to vector<32x96xf32>
    %5 = arith.addf %2, %4 : vector<32x96xf32>
    %6 = vector.extract_strided_slice %5 {offsets = [0, 0], sizes = [32, 32], strides = [1, 1]} : vector<32x96xf32> to vector<32x32xf32>
    %7 = arith.truncf %6 : vector<32x32xf32> to vector<32x32xbf16>
    %c0_5 = arith.constant 0 : index
    %c0_6 = arith.constant 0 : index
    %8 = vector.load %arg4[%c0_5, %c0_6] : memref<32x32xbf16, #tpu.memory_space<vmem>>, vector<32x32xbf16>
    tpu.vector_store %arg4[%c0_5, %c0_6], %7 {strides = array<i32>} : memref<32x32xbf16, #tpu.memory_space<vmem>>, vector<32x32xbf16>,
    %9 = vector.extract_strided_slice %5 {offsets = [0, 32], sizes = [32, 64], strides = [1, 1]} : vector<32x96xf32> to vector<32x64xf32>
    %10 = arith.truncf %9 : vector<32x64xf32> to vector<32x64xbf16>
    %c0_7 = arith.constant 0 : index
    %c0_8 = arith.constant 0 : index
    %11 = vector.load %arg5[%c0_7, %c0_8] : memref<32x64xbf16, #tpu.memory_space<vmem>>, vector<32x64xbf16>
    tpu.vector_store %arg5[%c0_7, %c0_8], %10 {strides = array<i32>} : memref<32x64xbf16, #tpu.memory_space<vmem>>, vector<32x64xbf16>,
    return
  }
  func.func @transform_0(%arg0: i32) -> (i32, i32) {
    %c0_i32 = arith.constant 0 : i32
    %c0_i32_0 = arith.constant 0 : i32
    return %arg0, %c0_i32 : i32, i32
  }
  func.func @transform_1(%arg0: i32) -> (i32, i32) {
    %c0_i32 = arith.constant 0 : i32
    %c0_i32_0 = arith.constant 0 : i32
    %c0_i32_1 = arith.constant 0 : i32
    return %c0_i32, %c0_i32_0 : i32, i32
  }
  func.func @transform_2(%arg0: i32) -> (i32, i32) {
    %c0_i32 = arith.constant 0 : i32
    %c0_i32_0 = arith.constant 0 : i32
    %c0_i32_1 = arith.constant 0 : i32
    return %c0_i32, %c0_i32_0 : i32, i32
  }
  func.func @transform_3(%arg0: i32) -> (i32, i32) {
    %c0_i32 = arith.constant 0 : i32
    %c0_i32_0 = arith.constant 0 : i32
    return %arg0, %c0_i32 : i32, i32
  }
  func.func @transform_4(%arg0: i32) -> (i32, i32) {
    %c0_i32 = arith.constant 0 : i32
    %c0_i32_0 = arith.constant 0 : i32
    return %arg0, %c0_i32 : i32, i32
  }
}

</mosaic_0001>

<bundles_post_ra>
// kernel: tpu_custom_call.1
= control target key start
LH: loop header
LB: loop body
LE: loop exit
PB: predicated region body
PF: predicated region fallthrough
CT: control target
= control target key end

     0   :  { %10 = vsyncpa [#allocation3], 0  ;;  %s690_s0 = inlined_call_operand.vmem [shape: bf16[64,32], index: 0, kind: input, shape index: {}]   ;;  %s691_s1 = inlined_call_operand.vmem [shape: bf16[32,96], index: 1, kind: input, shape index: {}]   ;;  %s692_s2 = inlined_call_operand.vmem [shape: f32[1,96], index: 2, kind: input, shape index: {}]   ;;  %s693_s3 = inlined_call_operand.vmem [shape: bf16[64,32], index: 3, kind: output, shape index: {0}]   ;;  %s694_s4 = inlined_call_operand.hbm [shape: bf16[64,64], index: 4, kind: output, shape index: {1}]  }
   0x1   :  { %12 = vsyncpa [#allocation3 + $0x1], 0  ;;  %s590_s15 = smov 0   ;;  %s592_s16 = smov 0  }
   0x2   :  { %s594_s17 = smov 0   ;;  %s596_s18 = smov 0  }
   0x3 LB: > { %s611_s19 = sadd.s32 4294967295, %s560_s18   ;;  %s416_s20 = sadd.s32 4294967294, %s560_s18   ;;  %s560_s18 = sphi %s596_s18, %s700_s18   ;;  %s556_s17 = sphi %s594_s17, %s699_s17   ;;  %s552_s16 = sphi %s592_s16, %s698_s16   ;;  %s548_s15 = sphi %s590_s15, %s697_s15  }
   0x4   : > { %s615_s21 = sadd.s32 1, %s560_s18   ;;  %s119_s22 = sadd.s32 1, %s556_s17 }
   0x5   : > { %s116_s23 = ssub.s32 %s560_s18, %s615_s21  ;;  %p129_p0 = scmp.ne.s32.totalorder %s556_s17, %s552_s16 }
   0x6   : > { %p117_p1 = scmp.eq.s32.totalorder %s116_s23, 0  ;;  %p130_p2 = scmp.eq.s32.totalorder %s611_s19, 1 }
   0x7   : > { %p135_p3 = scmp.ne.s32.totalorder %s552_s16, %s548_s15  ;;  %p136_p4 = scmp.eq.s32.totalorder %s416_s20, 1 }
   0x8   : > { %s626_s24 = scalar_select %p117_p1, %s556_s17, %s119_s22  }
   0x9   : > { %p628_p5 = por %p130_p2, %p129_p0  ;;  %p632_p6 = por %p136_p4, %p135_p3 }
   0xa   : > { %p419_p7 = scmp.ge.s32.totalorder %s560_s18, 1  ;;  %p169_p8 = scmp.lt.s32.totalorder %s560_s18, 3 }
   0xc   : > { %p170_p9 = pnand %p419_p7, %p169_p8 }
   0xd   : > { %s421_s29 = sshll.u32 (!%p170_p9), %s611_s19, 2  ;;  %s562_s20 = smov (!%p170_p9), 96  }
   0xe   : > { %173 = sbr.rel (%p170_p9) target bundleno = 285 (0x11d), region = 32  ;;  %p201_p10 = scmp.lt.s32.totalorder (!%p170_p9), %s421_s29, 7 }
   0xf   : > { %s197_s22 = sand.u32 (!%p170_p9), 1, %s552_s16   ;;  %s452_s27 = sshll.u32 (!%p170_p9), %s611_s19, 4 }
  0x10   : > { %s420_s23 = sshll.u32 (!%p170_p9), %s197_s22, 4  ;;  %s325_s5 = scalar_lea.hbm (!%p170_p9), %s694_s4, %s452_s27 }
  0x11   : > { %s199_s28 = scalar_lea.vmem (!%p170_p9), [#allocation2], %s420_s23  ;;  %s328_s7 = sshll.u32 (!%p170_p9), %s325_s5, 4  ;;  %s329_s7 = int_to_ptr.hbm [resolvable:$true] %s328_s7 }
  0x12   : > { %s310_s8 = scalar_lea.sflag (!%p170_p9), [#allocation3], %s197_s22  ;;  %s512_s19 = sshra.s32 (!%p170_p9), %s329_s7, 4  ;;  %s513_s19 = int_to_ptr.hbm [resolvable:$true] %s512_s19 }
  0x13   : > { %v451_v0 = vld [vmem:[%s691_s1 + $0x8] sm:$0xff]  ;;  %v450_v1 = vld [vmem:[%s691_s1] sm:$0xff]  ;;  %s702_s29 = smov (!%p201_p10, %s421_s29), 7  ;;  %vm248_vm0 = vcmask 261120   ;;  %vm278_vm1 = vcmask 257024   ;;  %vm299_vm2 = vcmask 519168   ;;  %p519_p0 = scmp.lt.s32.totalorder %s513_s19, %s694_s4 }
  0x14   : > { %261 = vmatpush.bf16.msra.mxu0 %v451_v0  ;;  %453 = vmatpush.bf16.msra.mxu1 %v451_v0  ;;  %s422_s6 = sshll.u32 %s702_s29, 2  ;;  %v497_v4 = vld [vmem:[%s692_s2] ss:$0 sm:$0xff]  ;;  %s518_s12 = scalar_lea.hbm %s694_s4, 32 }
  0x15   : > { %s204_s9 = scalar_lea.vmem %s690_s0, %s422_s6  ;;  %s210_s14 = scalar_lea.vmem %s693_s3, %s422_s6 }
  0x16   : > { %v448_v2 = vld [vmem:[%s204_s9] sm:$0xff]  ;;  %v449_v3 = vld [vmem:[%s204_s9 + $0x8] sm:$0xff]  ;;  %s326_s6 = sshll.u32 %s199_s28, 4  ;;  %s514_s9 = scalar_lea.hbm %s513_s19, 16  ;;  %s327_s6 = int_to_ptr.vmem [resolvable:$true] %s326_s6 }
  0x17   : > { %p515_p11 = scmp.ne.s32.totalorder %s513_s19, %s514_s9  ;;  %p520_p1 = scmp.lt.s32.totalorder %s518_s12, %s514_s9 }
  0x18   : > { %262 = vmatpush.bf16.msra.mxu0 %v450_v1  ;;  %454 = vmatpush.bf16.msra.mxu1 %v450_v1 }
  0x19   : > { %p516_p12 = pnand %p515_p11, %p628_p5  ;;  %p521_p2 = por %p520_p1, %p519_p0 }
  0x1b   : > { %441 = vmatmul.msk.bf16.vlgmr.msra.gmra.mxu0 %vm248_vm0, %v448_v2  ;;  %442 = vmatmul.msk.bf16.vlgmr.msra.gmra.mxu1 %vm248_vm0, %v449_v3  ;;  %p517_p13 = pneg %p516_p12 }
  0x1d   : > { %p522_p3 = pnand %p521_p2, %p517_p13 }
  0x98   : > { %v264_v5 = vpop.f32.mrf.mxu0  ;;  %v269_v6 = vpop.f32.mrf.mxu1 }
  0x99   : > { %v265_v7 = vadd.f32 %v497_v4, %v264_v5  ;;  %v270_v8 = vadd.f32 %v497_v4, %v269_v6 }
  0x9b   : > { %v274_v9 = vpack.c.bf16 %v265_v7, %v265_v7  ;;  %v276_v10 = vpack.c.bf16 %v270_v8, %v270_v8 }
  0x9d   : > { %279 = vst.msk [vmem:[%s210_s14] sm:$0xf] %vm278_vm1, %v274_v9  ;;  %291 = vrot.lane.b32.xlu1 %v276_v10, %s562_s20  ;;  %287 = vrot.lane.b32.xlu0 %v274_v9, %s562_s20 }
  0x9e   : > { %281 = vst.msk [vmem:[%s210_s14 + $0x8] sm:$0xf] %vm278_vm1, %v276_v10 }
  0xa0   : > { %v266_v11 = vpop.f32.mrf.mxu0  ;;  %v271_v12 = vpop.f32.mrf.mxu1 }
  0xa1   : > { %v267_v13 = vadd.f32 %v497_v4, %v266_v11  ;;  %v272_v14 = vadd.f32 %v497_v4, %v271_v12 }
  0xa3   : > { %v275_v15 = vpack.c.bf16 %v267_v13, %v267_v13  ;;  %v277_v16 = vpack.c.bf16 %v272_v14, %v272_v14 }
  0xa5   : > { %280 = vst.msk [vmem:[%s210_s14 + $0x4] sm:$0xf] %vm278_vm1, %v275_v15  ;;  %293 = vrot.lane.b32.xlu1 %v277_v16, %s562_s20  ;;  %289 = vrot.lane.b32.xlu0 %v275_v15, %s562_s20 }
  0xa6   : > { %282 = vst.msk [vmem:[%s210_s14 + $0xc] sm:$0xf] %vm278_vm1, %v277_v16 }
 0x10f   : > { %v292_v17 = vpop.permute.xlu1 %291  ;;  %v288_v18 = vpop.permute.xlu0 %287 }
 0x110   : > { %302 = vst.msk [vmem:[%s199_s28 + $0x8] sm:$0xf] %vm299_vm2, %v292_v17 }
 0x111   : > { %300 = vst.msk [vmem:[%s199_s28] sm:$0xf] %vm299_vm2, %v288_v18 }
 0x117   : > { %v294_v19 = vpop.permute.xlu1 %293  ;;  %v290_v20 = vpop.permute.xlu0 %289 }
 0x118   : > { %303 = vst.msk [vmem:[%s199_s28 + $0xc] sm:$0xf] %vm299_vm2, %v294_v19 }
 0x119   : > { %301 = vst.msk [vmem:[%s199_s28 + $0x4] sm:$0xf] %vm299_vm2, %v290_v20 }
 0x11a   : > { %525 = shalt.err (!%p522_p3)
}
 0x11b   : > { %s563_s20 = smov 64   ;;  %s564_s22 = smov 4  }
 0x11c   : > { %455 = dma.vmem_to_hbm [thread:$0]  (%p628_p5), %s327_s6, 256, %s329_s7, %s310_s8, %s563_s20, %s563_s20, %s564_s22  }
 0x11d PF: > { %p461_p4 = scmp.ge.s32.totalorder %s560_s18, 2  ;;  %s351_s23 = sand.u32 1, %s548_s15  }
 0x11e   : > { %s352_s27 = scalar_lea.sflag [#allocation3], %s351_s23 }
 0x11f   : > { %p458_p7 = pnand %p461_p4, %p632_p6 }
 0x121   : > { %p459_p8 = pneg %p458_p7 }
 0x123   : > { %543 = dma.done.wait (%p459_p8), %s352_s27, 256  }
 0x124   : > { %545 = vsyncadd (%p459_p8), %s352_s27, 4294967040  ;;  %p15_p9 = scmp.ge.s32.totalorder %s615_s21, 4   ;;  %s697_s15 = smov %s552_s16 }
 0x125   : > { %s698_s16 = smov %s556_s17  ;;  %s699_s17 = smov %s626_s24 }
 0x126   : > { %s700_s18 = smov %s615_s21  ;;  %17 = sbr.rel (!%p15_p9) target bundleno = 3 (0x3), region = 79 }
 0x12b   :  { %358 = vsyncpa [#allocation3], 1 }
 0x12c   :  { %360 = vsyncpa [#allocation3 + $0x1], 1 }

</bundles_post_ra>
